<compile_context>
chip_gen: v6e
topology: v6e:2x2x1
jax: 0.10.0
libtpu: 0.0.40
codegen_flags: <defaults>
</compile_context>

<pallas_src>
import functools
import math

import jax
import jax.numpy as jnp
from jax import lax
from jax.experimental import pallas as pl
from jax.experimental.pallas import tpu as pltpu


def make_positional_table(max_len, d_model, dtype=jnp.float32):
    """Replicates PositionalEncoding.__init__ buffer `pe` -> (max_len, 1, d_model)."""
    position = jnp.arange(max_len, dtype=jnp.float32)[:, None]               # (max_len, 1)
    div_term = jnp.exp(
        jnp.arange(0, d_model, 2, dtype=jnp.float32) * (-math.log(10000.0) / d_model)
    )                                                                        # (d_model/2,)
    pe = jnp.zeros((max_len, d_model), jnp.float32)
    pe = pe.at[:, 0::2].set(jnp.sin(position * div_term))
    pe = pe.at[:, 1::2].set(jnp.cos(position * div_term))
    # torch: pe.unsqueeze(0).transpose(0, 1) -> (max_len, 1, d_model)
    return pe[:, None, :].astype(dtype)


def _pe_kernel(seed_ref, x_ref, pe_ref, o_ref, *, batch, p, training, inv_keep):
    # x_ref/o_ref: (ts, B*D) lane-dense blocks; pe_ref: (ts, D).
    pe_row = pe_ref[...].astype(jnp.float32)                     # (ts, D)
    if batch > 1:
        # Broadcast pe across the batch inside the kernel (tiny tile).
        pe_row = jnp.concatenate([pe_row] * batch, axis=-1)      # (ts, B*D)
    y = x_ref[...].astype(jnp.float32) + pe_row

    if training and p > 0.0:
        # Counter-based hash PRNG (pure VPU integer ops; works on TPU and in
        # interpret mode).  Keyed on the GLOBAL (row, lane) position + seed,
        # so the dropout mask does not depend on the tiling.
        # TODO(synk): cannot bit-match torch.nn.Dropout's RNG stream.
        ts = x_ref.shape[0]
        row0 = (pl.program_id(0) * ts).astype(jnp.uint32)
        rows = lax.broadcasted_iota(jnp.uint32, y.shape, 0) + row0
        cols = lax.broadcasted_iota(jnp.uint32, y.shape, 1)
        h = (rows * jnp.uint32(0x9E3779B1)) ^ (cols * jnp.uint32(0x85EBCA77))
        h = h ^ seed_ref[0].astype(jnp.uint32)
        # murmur3 fmix32 finalizer
        h = h ^ (h >> jnp.uint32(16))
        h = h * jnp.uint32(0x85EBCA6B)
        h = h ^ (h >> jnp.uint32(13))
        h = h * jnp.uint32(0xC2B2AE35)
        h = h ^ (h >> jnp.uint32(16))
        thresh = jnp.uint32(min(int(round(p * 2.0 ** 32)), 2 ** 32 - 1))
        keep = h >= thresh                     # P(drop) = thresh / 2^32 ~= p
        y = jnp.where(keep, y * jnp.float32(inv_keep), jnp.float32(0.0))

    o_ref[...] = y.astype(o_ref.dtype)


def positional_encoding(x, pe, *, p=0.1, training=False, seed=0,
                        block_seq=None, target_block_bytes=2 << 20):
    """x: (S, B, D); pe: (max_len, 1, D).  Returns dropout(x + pe[:S])."""
    S, B, D = x.shape
    BD = B * D
    x2 = x.reshape(S, BD)                 # free reshape: row-major contiguous
    pe2 = pe[:S].reshape(S, D)            # matches self.pe[:x.size(0), :]

    itemsize = jnp.dtype(x.dtype).itemsize
    if block_seq is None:
        # ~target_block_bytes per x block so double-buffering actually overlaps
        # DMA with compute; fall back to the full S for small inputs.
        rows = max(1, target_block_bytes // max(BD * itemsize, 1))
        if rows >= S or S <= 8:
            block_seq = S
        else:
            block_seq = max(8, (rows // 8) * 8)
    block_seq = min(int(block_seq), S)
    if block_seq != S and block_seq % 8 != 0:
        block_seq = S                     # keep the (8, 128) sublane rule happy

    grid = (pl.cdiv(S, block_seq),)

    # Explicit VMEM budget: 2 buffers x (x block + out block) + pe strip + slack.
    ru = lambda a, b: -(-a // b) * b
    x_blk = ru(block_seq, 8) * ru(BD, 128) * itemsize
    pe_blk = ru(block_seq, 8) * ru(D, 128) * jnp.dtype(pe.dtype).itemsize
    budget = 2 * (2 * x_blk + pe_blk) + (1 << 20)
    vmem_limit = int(min(max(budget, 16 << 20), 64 << 20))   # headroom for v7x

    kernel = functools.partial(
        _pe_kernel,
        batch=B,
        p=float(p),
        training=bool(training),
        inv_keep=(1.0 / (1.0 - float(p))) if float(p) < 1.0 else 0.0,
    )

    out2 = pl.pallas_call(
        kernel,
        out_shape=jax.ShapeDtypeStruct((S, BD), x.dtype),
        grid_spec=pltpu.PrefetchScalarGridSpec(
            num_scalar_prefetch=1,
            grid=grid,
            in_specs=[
                pl.BlockSpec((block_seq, BD), lambda i, seed_ref: (i, 0)),
                pl.BlockSpec((block_seq, D), lambda i, seed_ref: (i, 0)),
            ],
            out_specs=pl.BlockSpec((block_seq, BD), lambda i, seed_ref: (i, 0)),
        ),
        compiler_params=pltpu.CompilerParams(
            dimension_semantics=("parallel",),
            vmem_limit_bytes=vmem_limit,
        ),
    )(jnp.asarray([seed], dtype=jnp.int32), x2, pe2)

    return out2.reshape(S, B, D)


if __name__ == "__main__":
    S, B, D = 16, 2, 128        # seq_len, batch, d_model
    MAX_LEN = 64
    P_DROP = 0.1

    key = jax.random.PRNGKey(0)
    x = jax.random.normal(key, (S, B, D), dtype=jnp.float32)
    pe = make_positional_table(MAX_LEN, D, dtype=jnp.float32)
    ref = x + pe[:S]

    # Eval mode (dropout = identity): must match x + pe[:S].
    out_eval = positional_encoding(x, pe, p=P_DROP, training=False)
    jax.block_until_ready(out_eval)
    assert out_eval.shape == (S, B, D)
    assert jnp.allclose(out_eval, ref, atol=1e-6, rtol=1e-6), "eval-mode mismatch"

    # Training mode: dropped entries are 0, kept entries are ref / (1 - p).
    out_tr = positional_encoding(x, pe, p=P_DROP, training=True, seed=123)
    jax.block_until_ready(out_tr)
    assert out_tr.shape == (S, B, D)
    dropped = out_tr == 0.0
    kept_ok = jnp.abs(out_tr - ref / (1.0 - P_DROP)) < 1e-5
    assert bool(jnp.all(dropped | kept_ok)), "training-mode dropout values malformed"
    frac = float(jnp.mean(dropped.astype(jnp.float32)))
    assert 0.02 <= frac <= 0.30, f"implausible drop fraction {frac}"

    # Dropout stream is position-based => invariant to the tiling choice.
    out_tr2 = positional_encoding(x, pe, p=P_DROP, training=True, seed=123,
                                  block_seq=8)
    jax.block_until_ready(out_tr2)
    assert bool(jnp.array_equal(out_tr, out_tr2)), "tiling changed dropout stream"

    print("KERNEL_OK")
</pallas_src>

<mosaic_0001>
module attributes {stable_mosaic.version = 11 : i64} {
  func.func @_pe_kernel(%arg0: i32, %arg1: memref<1xi32, #tpu.memory_space<smem>>, %arg2: memref<16x256xf32, #tpu.memory_space<vmem>>, %arg3: memref<16x128xf32, #tpu.memory_space<vmem>>, %arg4: memref<16x256xf32, #tpu.memory_space<vmem>>) attributes {dimension_semantics = [#tpu.dimension_semantics<parallel>], iteration_bounds = array<i64: 1>, scalar_prefetch = 1 : i64, scratch_operands = 0 : i64, tpu.core_type = #tpu.core_type<tc>, window_params = [{transform_indices = @transform_0, window_bounds = array<i64: 16, 256>}, {transform_indices = @transform_1, window_bounds = array<i64: 16, 128>}, {transform_indices = @transform_2, window_bounds = array<i64: 16, 256>}]} {
    %c0 = arith.constant 0 : index
    %c0_0 = arith.constant 0 : index
    %0 = vector.load %arg3[%c0, %c0_0] : memref<16x128xf32, #tpu.memory_space<vmem>>, vector<16x128xf32>
    %1 = tpu.concatenate %0, %0 in 1 : vector<16x128xf32>, vector<16x128xf32> -> vector<16x256xf32>
    %c0_1 = arith.constant 0 : index
    %c0_2 = arith.constant 0 : index
    %2 = vector.load %arg2[%c0_1, %c0_2] : memref<16x256xf32, #tpu.memory_space<vmem>>, vector<16x256xf32>
    %3 = arith.addf %2, %1 : vector<16x256xf32>
    %c0_3 = arith.constant 0 : index
    %c0_4 = arith.constant 0 : index
    %4 = vector.load %arg4[%c0_3, %c0_4] : memref<16x256xf32, #tpu.memory_space<vmem>>, vector<16x256xf32>
    tpu.vector_store %arg4[%c0_3, %c0_4], %3 {strides = array<i32>} : memref<16x256xf32, #tpu.memory_space<vmem>>, vector<16x256xf32>,
    return
  }
  func.func @transform_0(%arg0: i32, %arg1: memref<1xi32, #tpu.memory_space<smem>>) -> (i32, i32) {
    %c0_i32 = arith.constant 0 : i32
    %c0_i32_0 = arith.constant 0 : i32
    return %arg0, %c0_i32 : i32, i32
  }
  func.func @transform_1(%arg0: i32, %arg1: memref<1xi32, #tpu.memory_space<smem>>) -> (i32, i32) {
    %c0_i32 = arith.constant 0 : i32
    %c0_i32_0 = arith.constant 0 : i32
    return %arg0, %c0_i32 : i32, i32
  }
  func.func @transform_2(%arg0: i32, %arg1: memref<1xi32, #tpu.memory_space<smem>>) -> (i32, i32) {
    %c0_i32 = arith.constant 0 : i32
    %c0_i32_0 = arith.constant 0 : i32
    return %arg0, %c0_i32 : i32, i32
  }
}

</mosaic_0001>

<bundles_post_ra>
// kernel: tpu_custom_call.1
= control target key start
LH: loop header
LB: loop body
LE: loop exit
PB: predicated region body
PF: predicated region fallthrough
CT: control target
= control target key end

     0   :  { %9 = vsyncpa [#allocation5], 0  ;;  %s189_s0 = inlined_call_operand.<no memory space> [shape: s32[1], index: 0, kind: input, shape index: {}]   ;;  %s190_s1 = inlined_call_operand.hbm [shape: f32[16,256], index: 1, kind: input, shape index: {}]   ;;  %s191_s2 = inlined_call_operand.hbm [shape: f32[16,128], index: 2, kind: input, shape index: {}]   ;;  %s192_s3 = inlined_call_operand.hbm [shape: f32[16,256], index: 3, kind: output, shape index: {}]  }
   0x1   :  { %10 = vsyncpa [#allocation8], 0 }
   0x2   :  { %11 = vsyncpa [#allocation6], 0  ;;  %s147_s12 = smov [#allocation4]  }
   0x3   :  { %s17_s13 = sshll.u32 %s147_s12, 4  ;;  %s18_s13 = int_to_ptr.vmem [resolvable:$true] %s17_s13 }
   0x4   :  { %s89_s14 = scalar_lea.vmem %s18_s13, 512  ;;  %p94_p1 = scmp.lt.s32.totalorder %s18_s13, %s18_s13 }
   0x5   :  { %p90_p0 = scmp.ne.s32.totalorder %s18_s13, %s89_s14  ;;  %p95_p2 = scmp.lt.s32.totalorder %s89_s14, %s89_s14 }
   0x7   :  { %p96_p3 = por %p95_p2, %p94_p1 }
   0x9   :  { %p97_p4 = pnand %p96_p3, %p90_p0 }
   0xb   :  { %100 = shalt.err (!%p97_p4)
}
   0xc   :  { %s148_s0 = smov 256   ;;  %s149_s15 = smov 16  }
   0xd   :  { %23 = dma.hbm_to_vmem [thread:$0]  %s190_s1, 512, %s18_s13, [#allocation5], %s148_s0, %s148_s0, %s149_s15  }
   0xe   :  { %s150_s18 = smov [#allocation7]  }
   0xf   :  { %s29_s19 = sshll.u32 %s150_s18, 4  ;;  %s30_s19 = int_to_ptr.vmem [resolvable:$true] %s29_s19 }
  0x10   :  { %s109_s20 = scalar_lea.vmem %s30_s19, 256  ;;  %p114_p6 = scmp.lt.s32.totalorder %s30_s19, %s30_s19 }
  0x11   :  { %p110_p5 = scmp.ne.s32.totalorder %s30_s19, %s109_s20  ;;  %p115_p7 = scmp.lt.s32.totalorder %s109_s20, %s109_s20 }
  0x13   :  { %p116_p8 = por %p115_p7, %p114_p6 }
  0x15   :  { %p117_p9 = pnand %p116_p8, %p110_p5 }
  0x17   :  { %120 = shalt.err (!%p117_p9)
}
  0x18   :  { %s151_s21 = smov 128   ;;  %s152_s22 = smov 8  }
  0x19   :  { %35 = dma.hbm_to_vmem [thread:$0]  %s191_s2, 256, %s30_s19, [#allocation8], %s151_s21, %s151_s21, %s152_s22  }
  0x1a   :  { %141 = dma.done.wait [#allocation5], 512  }
  0x1b   :  { %142 = vsyncadd [#allocation5], 4294966784 }
  0x1c   :  { %143 = dma.done.wait [#allocation8], 256  }
  0x1d   :  { %144 = vsyncadd [#allocation8], 4294967040  ;;  %s153_s1 = smov [#allocation9]   ;;  %v42_v0 = vld [vmem:[#allocation7] sm:$0xff]  ;;  %v45_v2 = vld [vmem:[#allocation4 + $0x8] sm:$0xff] }
  0x1e   :  { %s61_s25 = sshll.u32 %s153_s1, 4  ;;  %v44_v1 = vld [vmem:[#allocation4] sm:$0xff]  ;;  %v49_v4 = vadd.f32 %v45_v2, %v42_v0  ;;  %v43_v5 = vld [vmem:[#allocation7 + $0x8] sm:$0xff]  ;;  %v46_v6 = vld [vmem:[#allocation4 + $0x10] sm:$0xff]  ;;  %s62_s25 = int_to_ptr.vmem [resolvable:$true] %s61_s25 }
  0x1f   :  { %v48_v3 = vadd.f32 %v44_v1, %v42_v0  ;;  %v47_v7 = vld [vmem:[#allocation4 + $0x18] sm:$0xff]  ;;  %v50_v8 = vadd.f32 %v46_v6, %v43_v5  ;;  %s121_s2 = scalar_lea.vmem %s62_s25, 512  ;;  %p126_p11 = scmp.lt.s32.totalorder %s62_s25, %s62_s25 }
  0x20   :  { %v51_v9 = vadd.f32 %v47_v7, %v43_v5  ;;  %53 = vst [vmem:[#allocation9 + $0x8] sm:$0xff] %v49_v4  ;;  %p122_p10 = scmp.ne.s32.totalorder %s62_s25, %s121_s2  ;;  %p127_p12 = scmp.lt.s32.totalorder %s121_s2, %s121_s2 }
  0x21   :  { %52 = vst [vmem:[#allocation9] sm:$0xff] %v48_v3  ;;  %54 = vst [vmem:[#allocation9 + $0x10] sm:$0xff] %v50_v8 }
  0x22   :  { %55 = vst [vmem:[#allocation9 + $0x18] sm:$0xff] %v51_v9  ;;  %p128_p13 = por %p127_p12, %p126_p11 }
  0x24   :  { %p129_p0 = pnand %p128_p13, %p122_p10 }
  0x26   :  { %132 = shalt.err (!%p129_p0)
}
  0x27   :  { %67 = dma.vmem_to_hbm [thread:$0]  %s62_s25, 512, %s192_s3, [#allocation6], %s148_s0, %s148_s0, %s149_s15  }
  0x28   :  { %145 = dma.done.wait [#allocation6], 512  }
  0x29   :  { %146 = vsyncadd [#allocation6], 4294966784 }
  0x2a   :  { %71 = vsyncpa [#allocation5], 1 }
  0x2b   :  { %72 = vsyncpa [#allocation8], 1 }
  0x2c   :  { %73 = vsyncpa [#allocation6], 1 }

</bundles_post_ra>
